<compile_context>
chip_gen: v7x
topology: tpu7x:2x2x1
jax: 0.10.0
libtpu: 0.0.40
codegen_flags: <defaults>
</compile_context>

<pallas_src>
import functools

import jax
import jax.numpy as jnp
from jax.experimental import pallas as pl
from jax.experimental.pallas import tpu as pltpu


def _gelu_tanh(x):
    # GELU, tanh approximation (matches torch.nn.GELU('tanh')).
    c = 0.7978845608028654  # sqrt(2/pi)
    return 0.5 * x * (1.0 + jnp.tanh(c * (x + 0.044715 * x * x * x)))


def _conv2conv_kernel(x_ref, w_ref, wt_ref, bi_ref, bo_ref, o_ref):
    # x_ref : (E, tp)  pixel tile, channels on sublanes, pixels on lanes
    # w_ref : (I, E)   shared weight (resident)
    # wt_ref: (E, I)   pre-transposed weight (resident)
    # bi_ref: (I, 1), bo_ref: (E, 1)  biases (broadcast along lanes)
    # o_ref : (E, tp)
    x = x_ref[...]
    w = w_ref[...]
    wt = wt_ref[...]

    # 1x1 conv #1: channels E -> I  (MXU, f32 accumulation)
    mid = jnp.dot(w, x, preferred_element_type=jnp.float32) + bi_ref[...]
    act = _gelu_tanh(mid).astype(wt.dtype)

    # 1x1 conv #2 with transposed weight: channels I -> E
    out = jnp.dot(wt, act, preferred_element_type=jnp.float32) + bo_ref[...]
    o_ref[...] = out.astype(o_ref.dtype)


@functools.partial(jax.jit, static_argnames=("tile_p",))
def conv_2_conv_cheap_forward(x_nchw, w, bias_int, bias_out, tile_p=2048):
    """x_nchw: (N, E, H, W); w: (I, E); bias_int: (I,); bias_out: (E,)."""
    n, e, h, ww = x_nchw.shape
    i_dim = w.shape[0]
    hw = h * ww

    # Native channel-major layout: (N, E, H, W) -> (N, E, HW).  Pure reshape.
    x3 = x_nchw.reshape(n, e, hw)

    # Pixel tile on the lane axis.  If HW fits in one tile, use it whole
    # (block last dim == full array dim, always legal); otherwise tile with a
    # 128-multiple tile and pad the pixel axis up to a multiple of it.
    if hw <= tile_p:
        tp = hw
        hw_pad = hw
    else:
        assert tile_p % 128 == 0, "tile_p must be a multiple of 128"
        tp = tile_p
        hw_pad = ((hw + tp - 1) // tp) * tp
        if hw_pad != hw:
            x3 = jnp.pad(x3, ((0, 0), (0, 0), (0, hw_pad - hw)))

    compute_dtype = x_nchw.dtype
    w_c = w.astype(compute_dtype)           # (I, E), fed to MXU as stored
    wt_c = w.T.astype(compute_dtype)        # (E, I), tiny pre-transposed copy
    bi = bias_int.astype(jnp.float32).reshape(i_dim, 1)
    bo = bias_out.astype(jnp.float32).reshape(e, 1)

    grid = (n, hw_pad // tp)

    out_flat = pl.pallas_call(
        _conv2conv_kernel,
        out_shape=jax.ShapeDtypeStruct((n, e, hw_pad), x_nchw.dtype),
        grid_spec=pltpu.PrefetchScalarGridSpec(
            num_scalar_prefetch=0,
            grid=grid,
            in_specs=[
                # X tile: batch dim squeezed, (E, tp) presented to the kernel.
                pl.BlockSpec((None, e, tp), lambda b, j: (b, 0, j)),
                pl.BlockSpec((i_dim, e), lambda b, j: (0, 0)),   # W (resident)
                pl.BlockSpec((e, i_dim), lambda b, j: (0, 0)),   # W^T (resident)
                pl.BlockSpec((i_dim, 1), lambda b, j: (0, 0)),   # bias_int
                pl.BlockSpec((e, 1), lambda b, j: (0, 0)),       # bias_out
            ],
            out_specs=pl.BlockSpec((None, e, tp), lambda b, j: (b, 0, j)),
        ),
        compiler_params=pltpu.CompilerParams(
            dimension_semantics=("parallel", "parallel")),
    )(x3, w_c, wt_c, bi, bo)

    if hw_pad != hw:
        out_flat = out_flat[:, :, :hw]
    return out_flat.reshape(n, e, h, ww)


def _reference(x_nchw, w, bias_int, bias_out):
    # Pure-JAX reference of the PyTorch forward (eval mode).
    n, e, h, ww = x_nchw.shape
    xf = jnp.transpose(x_nchw, (0, 2, 3, 1)).reshape(-1, e).astype(jnp.float32)
    mid = xf @ w.T.astype(jnp.float32) + bias_int
    act = _gelu_tanh(mid)
    out = act @ w.astype(jnp.float32) + bias_out
    return jnp.transpose(out.reshape(n, h, ww, e), (0, 3, 1, 2)).astype(x_nchw.dtype)


if __name__ == "__main__":
    # Small shapes consistent with the module: embedding_dim=32, squeeze_ratio=4.
    embedding_dim = 32
    squeeze_ratio = 4
    intermediate_dim = embedding_dim * squeeze_ratio  # 128

    key = jax.random.PRNGKey(0)
    k_x, k_w, k_x2 = jax.random.split(key, 3)

    # Deterministic parameter init mirroring the PyTorch __init__:
    #   W ~ randn(I, E, 1, 1) / sqrt((E + I) / 2); biases zero.
    w = (jax.random.normal(k_w, (intermediate_dim, embedding_dim), jnp.float32)
         / ((embedding_dim + intermediate_dim) / 2.0) ** 0.5)
    bias_int = jnp.zeros((intermediate_dim,), jnp.float32)
    bias_out = jnp.zeros((embedding_dim,), jnp.float32)

    # Test 1: single-tile path (HW <= tile_p).
    N, H, W = 2, 8, 8
    x = jax.random.normal(k_x, (N, embedding_dim, H, W), jnp.float32)
    out = jax.block_until_ready(conv_2_conv_cheap_forward(x, w, bias_int, bias_out))
    ref = _reference(x, w, bias_int, bias_out)
    assert out.shape == (N, embedding_dim, H, W)
    assert jnp.allclose(out, ref, atol=1e-4, rtol=1e-4), "mismatch vs reference (t1)"

    # Test 2: tiled + padded pixel axis (HW not a multiple of the tile).
    H2, W2 = 18, 18  # HW = 324, tile_p = 256 -> padded to 512, grid (2, 2)
    x2 = jax.random.normal(k_x2, (N, embedding_dim, H2, W2), jnp.float32)
    out2 = jax.block_until_ready(
        conv_2_conv_cheap_forward(x2, w, bias_int, bias_out, tile_p=256))
    ref2 = _reference(x2, w, bias_int, bias_out)
    assert out2.shape == (N, embedding_dim, H2, W2)
    assert jnp.allclose(out2, ref2, atol=1e-4, rtol=1e-4), "mismatch vs reference (t2)"

    print("KERNEL_OK")
</pallas_src>

<mosaic_0001>
module attributes {stable_mosaic.version = 11 : i64} {
  func.func @_conv2conv_kernel(%arg0: i32, %arg1: i32, %arg2: memref<1x32x64xf32, #tpu.memory_space<vmem>>, %arg3: memref<128x32xf32, #tpu.memory_space<vmem>>, %arg4: memref<32x128xf32, #tpu.memory_space<vmem>>, %arg5: memref<128x1xf32, #tpu.memory_space<vmem>>, %arg6: memref<32x1xf32, #tpu.memory_space<vmem>>, %arg7: memref<1x32x64xf32, #tpu.memory_space<vmem>>) attributes {dimension_semantics = [#tpu.dimension_semantics<parallel>, #tpu.dimension_semantics<parallel>], iteration_bounds = array<i64: 2, 1>, scalar_prefetch = 0 : i64, scratch_operands = 0 : i64, tpu.core_type = #tpu.core_type<tc>, window_params = [{transform_indices = @transform_0, window_bounds = array<i64: 1, 32, 64>}, {pipeline_mode = #tpu.pipeline_mode<synchronous>, transform_indices = @transform_1, window_bounds = array<i64: 128, 32>}, {pipeline_mode = #tpu.pipeline_mode<synchronous>, transform_indices = @transform_2, window_bounds = array<i64: 32, 128>}, {pipeline_mode = #tpu.pipeline_mode<synchronous>, transform_indices = @transform_3, window_bounds = array<i64: 128, 1>}, {pipeline_mode = #tpu.pipeline_mode<synchronous>, transform_indices = @transform_4, window_bounds = array<i64: 32, 1>}, {transform_indices = @transform_5, window_bounds = array<i64: 1, 32, 64>}]} {
    %c0 = arith.constant 0 : index
    %c0_0 = arith.constant 0 : index
    %c0_1 = arith.constant 0 : index
    %0 = vector.load %arg2[%c0, %c0_0, %c0_1] : memref<1x32x64xf32, #tpu.memory_space<vmem>>, vector<1x32x64xf32>
    %1 = vector.shape_cast %0 : vector<1x32x64xf32> to vector<32x64xf32>
    %c0_2 = arith.constant 0 : index
    %c0_3 = arith.constant 0 : index
    %2 = vector.load %arg3[%c0_2, %c0_3] : memref<128x32xf32, #tpu.memory_space<vmem>>, vector<128x32xf32>
    %c0_4 = arith.constant 0 : index
    %c0_5 = arith.constant 0 : index
    %3 = vector.load %arg4[%c0_4, %c0_5] : memref<32x128xf32, #tpu.memory_space<vmem>>, vector<32x128xf32>
    %cst = arith.constant dense<0.000000e+00> : vector<128x64xf32>
    %4 = tpu.matmul %2, %1, %cst {dimension_numbers = #tpu.dot_dimension_numbers<[1], [0], [0], [1], [0, 0, 1, 1], [], []>} : vector<128x32xf32>, vector<32x64xf32>, vector<128x64xf32> -> vector<128x64xf32>
    %c0_6 = arith.constant 0 : index
    %c0_7 = arith.constant 0 : index
    %5 = vector.load %arg5[%c0_6, %c0_7] : memref<128x1xf32, #tpu.memory_space<vmem>>, vector<128x1xf32>
    %6 = vector.broadcast %5 : vector<128x1xf32> to vector<128x64xf32>
    %7 = arith.addf %4, %6 : vector<128x64xf32>
    %cst_8 = arith.constant 5.000000e-01 : f32
    %8 = vector.broadcast %cst_8 : f32 to vector<128x64xf32>
    %9 = arith.mulf %8, %7 : vector<128x64xf32>
    %cst_9 = arith.constant 4.471500e-02 : f32
    %10 = vector.broadcast %cst_9 : f32 to vector<128x64xf32>
    %11 = arith.mulf %10, %7 : vector<128x64xf32>
    %12 = arith.mulf %11, %7 : vector<128x64xf32>
    %13 = arith.mulf %12, %7 : vector<128x64xf32>
    %14 = arith.addf %7, %13 : vector<128x64xf32>
    %cst_10 = arith.constant 0.797884583 : f32
    %15 = vector.broadcast %cst_10 : f32 to vector<128x64xf32>
    %16 = arith.mulf %15, %14 : vector<128x64xf32>
    %17 = math.tanh %16 : vector<128x64xf32>
    %cst_11 = arith.constant 1.000000e+00 : f32
    %18 = vector.broadcast %cst_11 : f32 to vector<128x64xf32>
    %19 = arith.addf %18, %17 : vector<128x64xf32>
    %20 = arith.mulf %9, %19 : vector<128x64xf32>
    %cst_12 = arith.constant dense<0.000000e+00> : vector<32x64xf32>
    %21 = tpu.matmul %3, %20, %cst_12 {dimension_numbers = #tpu.dot_dimension_numbers<[1], [0], [0], [1], [0, 0, 1, 1], [], []>} : vector<32x128xf32>, vector<128x64xf32>, vector<32x64xf32> -> vector<32x64xf32>
    %c0_13 = arith.constant 0 : index
    %c0_14 = arith.constant 0 : index
    %22 = vector.load %arg6[%c0_13, %c0_14] : memref<32x1xf32, #tpu.memory_space<vmem>>, vector<32x1xf32>
    %23 = vector.broadcast %22 : vector<32x1xf32> to vector<32x64xf32>
    %24 = arith.addf %21, %23 : vector<32x64xf32>
    %c0_15 = arith.constant 0 : index
    %c0_16 = arith.constant 0 : index
    %c0_17 = arith.constant 0 : index
    %25 = vector.load %arg7[%c0_15, %c0_16, %c0_17] : memref<1x32x64xf32, #tpu.memory_space<vmem>>, vector<1x32x64xf32>
    %26 = vector.shape_cast %25 : vector<1x32x64xf32> to vector<32x64xf32>
    %27 = vector.shape_cast %24 : vector<32x64xf32> to vector<1x32x64xf32>
    tpu.vector_store %arg7[%c0_15, %c0_16, %c0_17], %27 {strides = array<i32>} : memref<1x32x64xf32, #tpu.memory_space<vmem>>, vector<1x32x64xf32>,
    return
  }
  func.func @transform_0(%arg0: i32, %arg1: i32) -> (i32, i32, i32) {
    %c0_i32 = arith.constant 0 : i32
    %c0_i32_0 = arith.constant 0 : i32
    return %arg0, %c0_i32, %arg1 : i32, i32, i32
  }
  func.func @transform_1(%arg0: i32, %arg1: i32) -> (i32, i32) {
    %c0_i32 = arith.constant 0 : i32
    %c0_i32_0 = arith.constant 0 : i32
    %c0_i32_1 = arith.constant 0 : i32
    return %c0_i32, %c0_i32_0 : i32, i32
  }
  func.func @transform_2(%arg0: i32, %arg1: i32) -> (i32, i32) {
    %c0_i32 = arith.constant 0 : i32
    %c0_i32_0 = arith.constant 0 : i32
    %c0_i32_1 = arith.constant 0 : i32
    return %c0_i32, %c0_i32_0 : i32, i32
  }
  func.func @transform_3(%arg0: i32, %arg1: i32) -> (i32, i32) {
    %c0_i32 = arith.constant 0 : i32
    %c0_i32_0 = arith.constant 0 : i32
    %c0_i32_1 = arith.constant 0 : i32
    return %c0_i32, %c0_i32_0 : i32, i32
  }
  func.func @transform_4(%arg0: i32, %arg1: i32) -> (i32, i32) {
    %c0_i32 = arith.constant 0 : i32
    %c0_i32_0 = arith.constant 0 : i32
    %c0_i32_1 = arith.constant 0 : i32
    return %c0_i32, %c0_i32_0 : i32, i32
  }
  func.func @transform_5(%arg0: i32, %arg1: i32) -> (i32, i32, i32) {
    %c0_i32 = arith.constant 0 : i32
    %c0_i32_0 = arith.constant 0 : i32
    return %arg0, %c0_i32, %arg1 : i32, i32, i32
  }
}

</mosaic_0001>

<bundles_post_ra>
// kernel: conv_2_conv_cheap_forward.1
= control target key start
LH: loop header
LB: loop body
LE: loop exit
PB: predicated region body
PF: predicated region fallthrough
CT: control target
= control target key end

     0   :  { %s1204_s18 = smov 0   ;;  %s1206_s19 = smov 0   ;;  %s1464_s0 = inlined_call_operand.vmem [shape: f32[2,32,64], index: 0, kind: input, shape index: {}]   ;;  %s1465_s1 = inlined_call_operand.vmem [shape: f32[128,32], index: 1, kind: input, shape index: {}]   ;;  %s1466_s2 = inlined_call_operand.vmem [shape: f32[32,128], index: 2, kind: input, shape index: {}]   ;;  %s1467_s3 = inlined_call_operand.vmem [shape: f32[128,1], index: 3, kind: input, shape index: {}]   ;;  %s1468_s4 = inlined_call_operand.vmem [shape: f32[32,1], index: 4, kind: input, shape index: {}]   ;;  %s1469_s5 = inlined_call_operand.vmem [shape: f32[2,32,64], index: 5, kind: output, shape index: {}]  }
   0x1   :  { %s1208_s20 = smov 0  }
   0x2 LB: > { %s27_s21 = sadd.s32 1, %s1167_s19  ;;  %p915_p0 = scmp.ge.s32.totalorder %s1171_s20, 1  ;;  %s1171_s20 = sphi %s1208_s20, %s15_s20   ;;  %s1167_s19 = sphi %s1206_s19, %s1471_s19   ;;  %s1163_s18 = sphi %s1204_s18, %s1470_s18  }
   0x3   : > { %p29_p1 = scmp.ge.s32.totalorder %s27_s21, 2  ;;  %p206_p2 = scmp.lt.s32.totalorder %s1171_s20, 3 }
   0x5   : > { %s1473_s21 = smov (%p29_p1, %s27_s21), 0  ;;  %p207_p3 = pnand %p915_p0, %p206_p2 }
   0x6   : > { %p240_p4 = scmp.lt.s32.totalorder (!%p207_p3), %s1163_s18, 1  ;;  %v260_v0 = vld [vmem:[%s1465_s1] sm:$0xff] (!%p207_p3)  ;;  %vm376_vm0 = vcmask (!%p207_p3), 261120   ;;  %v1173_v1 = vmov (!%p207_p3), 0   ;;  %v282_v3 = vld [vmem:[%s1467_s3 + $0x10] sm:$0xff] (!%p207_p3)  ;;  %v281_v9 = vld [vmem:[%s1467_s3 + $0x8] sm:$0xff] (!%p207_p3) }
   0x7   : > { %210 = sbr.rel (%p207_p3) target bundleno = 527 (0x20f), region = 40  ;;  %988 = vmatprep.mubr.msk.f32.mxu0 (!%p207_p3), %vm376_vm0, %v260_v0  ;;  %1115 = vset.pattern.permute.xlu0 (!%p207_p3), %v1173_v1  ;;  %v280_v2 = vld [vmem:[%s1467_s3] sm:$0xff] (!%p207_p3)  ;;  %v283_v11 = vld [vmem:[%s1467_s3 + $0x18] sm:$0xff] (!%p207_p3)  ;;  %v285_v13 = vld [vmem:[%s1467_s3 + $0x28] sm:$0xff] (!%p207_p3)  ;;  %vm823_vm1 = vcmask (!%p207_p3), 523264  }
   0x8   : > { %1116 = vset.pattern.permute.xlu1 (!%p207_p3), %v1173_v1  ;;  %298 = vperm.xlu0 (!%p207_p3), %1115, %v280_v2   ;;  %v284_v12 = vld [vmem:[%s1467_s3 + $0x20] sm:$0xff] (!%p207_p3)  ;;  %v261_v14 = vld [vmem:[%s1465_s1 + $0x8] sm:$0xff] (!%p207_p3)  ;;  %v262_v15 = vld [vmem:[%s1465_s1 + $0x10] sm:$0xff] (!%p207_p3) }
   0x9   : > { %308 = vperm.xlu1 (!%p207_p3), %1116, %v282_v3   ;;  %v286_v16 = vld [vmem:[%s1467_s3 + $0x30] sm:$0xff] (!%p207_p3)  ;;  %v287_v17 = vld [vmem:[%s1467_s3 + $0x38] sm:$0xff] (!%p207_p3)  ;;  %v264_v19 = vld [vmem:[%s1465_s1 + $0x20] sm:$0xff] (!%p207_p3) }
   0xa   : > { %v263_v18 = vld [vmem:[%s1465_s1 + $0x18] sm:$0xff] (!%p207_p3)  ;;  %v288_v20 = vld [vmem:[%s1467_s3 + $0x40] sm:$0xff] (!%p207_p3)  ;;  %v289_v21 = vld [vmem:[%s1467_s3 + $0x48] sm:$0xff] (!%p207_p3) }
   0xb   : > { %v265_v22 = vld [vmem:[%s1465_s1 + $0x28] sm:$0xff] (!%p207_p3)  ;;  %v266_v23 = vld [vmem:[%s1465_s1 + $0x30] sm:$0xff] (!%p207_p3)  ;;  %v291_v25 = vld [vmem:[%s1467_s3 + $0x58] sm:$0xff] (!%p207_p3) }
   0xc   : > { %303 = vperm.xlu0 (!%p207_p3), %1115, %v281_v9   ;;  %v290_v24 = vld [vmem:[%s1467_s3 + $0x50] sm:$0xff] (!%p207_p3)  ;;  %v267_v26 = vld [vmem:[%s1465_s1 + $0x38] sm:$0xff] (!%p207_p3)  ;;  %v268_v27 = vld [vmem:[%s1465_s1 + $0x40] sm:$0xff] (!%p207_p3) }
   0xd   : > { %313 = vperm.xlu1 (!%p207_p3), %1116, %v283_v11   ;;  %v292_v28 = vld [vmem:[%s1467_s3 + $0x60] sm:$0xff] (!%p207_p3)  ;;  %v293_v29 = vld [vmem:[%s1467_s3 + $0x68] sm:$0xff] (!%p207_p3)  ;;  %v270_v31 = vld [vmem:[%s1465_s1 + $0x50] sm:$0xff] (!%p207_p3) }
   0xe   : > { %s1475_s18 = smov (!%p240_p4, %s1163_s18), 1  ;;  %v269_v30 = vld [vmem:[%s1465_s1 + $0x48] sm:$0xff]  ;;  %v294_v32 = vld [vmem:[%s1467_s3 + $0x70] sm:$0xff]  ;;  %v295_v33 = vld [vmem:[%s1467_s3 + $0x78] sm:$0xff] }
   0xf   : > { %s938_s24 = sshll.u32 %s1475_s18, 5  ;;  %v271_v34 = vld [vmem:[%s1465_s1 + $0x58] sm:$0xff]  ;;  %v272_v35 = vld [vmem:[%s1465_s1 + $0x60] sm:$0xff]  ;;  %v715_v37 = vld [vmem:[%s1468_s4 + $0x8] sm:$0xff] }
  0x10   : > { %s247_s27 = scalar_lea.vmem %s1464_s0, %s938_s24  ;;  %318 = vperm.xlu0 %1115, %v284_v12   ;;  %v714_v36 = vld [vmem:[%s1468_s4] sm:$0xff]  ;;  %v273_v38 = vld [vmem:[%s1465_s1 + $0x68] sm:$0xff]  ;;  %v274_v39 = vld [vmem:[%s1465_s1 + $0x70] sm:$0xff]  ;;  %s255_s28 = scalar_lea.vmem %s1469_s5, %s938_s24 }
  0x11   : > { %v256_v4 = vld [vmem:[%s247_s27] sm:$0xff]  ;;  %v257_v5 = vld [vmem:[%s247_s27 + $0x8] sm:$0xff]  ;;  %v258_v6 = vld [vmem:[%s247_s27 + $0x10] sm:$0xff]  ;;  %323 = vperm.xlu1 %1116, %v285_v13  }
  0x12   : > { %v1050_v7 = vpack.c.bf16 %v257_v5, %v256_v4  ;;  %v259_v8 = vld [vmem:[%s247_s27 + $0x18] sm:$0xff]  ;;  %v716_v40 = vld [vmem:[%s1468_s4 + $0x10] sm:$0xff]  ;;  %v276_v43 = vld [vmem:[%s1466_s2] sm:$0xff] }
  0x13   : > { %v1054_v10 = vpack.c.bf16 %v259_v8, %v258_v6  ;;  %v717_v41 = vld [vmem:[%s1468_s4 + $0x18] sm:$0xff]  ;;  %1044 = vmatprep.mubr.f32.mxu1 %v276_v43 }
  0x14   : > { %1051 = vmatprep.subr.bf16.mxu0 %v1050_v7  ;;  %328 = vperm.xlu0 %1115, %v286_v16   ;;  %v275_v42 = vld [vmem:[%s1465_s1 + $0x78] sm:$0xff] }
  0x15   : > { %1053 = vmatpush3.bf16.msra.mxu0 %v1050_v7  ;;  %333 = vperm.xlu1 %1116, %v287_v17  }
  0x16   : > { %1055 = vmatprep.subr.bf16.mxu0 %v1054_v10 }
  0x18   : > { %338 = vperm.xlu0 %1115, %v288_v20  }
  0x19   : > { %1057 = vmatpush3.bf16.msra.mxu0 %v1054_v10  ;;  %343 = vperm.xlu1 %1116, %v289_v21  }
  0x1c   : > { %989 = vmatmul.mubr.msk.f32.vlgmr.msra.gmra.mrb[0].mxu0 %vm376_vm0, %v261_v14  ;;  %348 = vperm.xlu0 %1115, %v290_v24  }
  0x1d   : > { %991 = vmatprep.mubr.msk.f32.mxu0 %vm376_vm0, %v262_v15  ;;  %353 = vperm.xlu1 %1116, %v291_v25  }
  0x20   : > { %992 = vmatmul.mubr.msk.f32.gmra.mrb[2].mxu0 %vm376_vm0, %v263_v18  ;;  %358 = vperm.xlu0 %1115, %v292_v28  }
  0x21   : > { %994 = vmatprep.mubr.msk.f32.mxu0 %vm376_vm0, %v264_v19  ;;  %363 = vperm.xlu1 %1116, %v293_v29  }
  0x24   : > { %995 = vmatmul.mubr.msk.f32.gmra.mrb[4].mxu0 %vm376_vm0, %v265_v22  ;;  %368 = vperm.xlu0 %1115, %v294_v32  }
  0x25   : > { %997 = vmatprep.mubr.msk.f32.mxu0 %vm376_vm0, %v266_v23  ;;  %373 = vperm.xlu1 %1116, %v295_v33  }
  0x28   : > { %998 = vmatmul.mubr.msk.f32.gmra.mrb[6].mxu0 %vm376_vm0, %v267_v26  ;;  %720 = vperm.xlu0 %1115, %v714_v36  }
  0x29   : > { %1000 = vmatprep.mubr.msk.f32.mxu0 %vm376_vm0, %v268_v27  ;;  %725 = vperm.xlu1 %1116, %v715_v37  }
  0x2c   : > { %1001 = vmatmul.mubr.msk.f32.gmra.mrb[8].mxu0 %vm376_vm0, %v269_v30  ;;  %730 = vperm.xlu0 %1115, %v716_v40  }
  0x2d   : > { %1003 = vmatprep.mubr.msk.f32.mxu0 %vm376_vm0, %v270_v31  ;;  %735 = vperm.xlu1 %1116, %v717_v41  }
  0x30   : > { %1004 = vmatmul.mubr.msk.f32.gmra.mrb[10].mxu0 %vm376_vm0, %v271_v34 }
  0x31   : > { %1006 = vmatprep.mubr.msk.f32.mxu0 %vm376_vm0, %v272_v35 }
  0x34   : > { %1007 = vmatmul.mubr.msk.f32.gmra.mrb[12].mxu0 %vm376_vm0, %v273_v38 }
  0x35   : > { %1009 = vmatprep.mubr.msk.f32.mxu0 %vm376_vm0, %v274_v39 }
  0x38   : > { %1010 = vmatmul.mubr.msk.f32.gmra.mrb[14].mxu0 %vm376_vm0, %v275_v42 }
  0x87   : > { %v299_v45 = vpop.permute.xlu0 %298 }
  0x88   : > { %v309_v44 = vpop.permute.xlu1 %308 }
  0x8b   : > { %v304_v47 = vpop.permute.xlu0 %303 }
  0x8c   : > { %v314_v46 = vpop.permute.xlu1 %313 }
  0x8f   : > { %v319_v49 = vpop.permute.xlu0 %318 }
  0x90   : > { %v324_v48 = vpop.permute.xlu1 %323 }
  0x93   : > { %v329_v58 = vpop.permute.xlu0 %328 }
  0x94   : > { %v334_v55 = vpop.permute.xlu1 %333 }
  0x97   : > { %v339_v13 = vpop.permute.xlu0 %338 }
  0x98   : > { %v344_v9 = vpop.permute.xlu1 %343 }
  0x9b   : > { %v349_v38 = vpop.permute.xlu0 %348 }
  0x9c   : > { %v354_v32 = vpop.permute.xlu1 %353 }
  0xef   : > { %v990_v50 = vpop.f32.mrb[0].mxu0 }
  0xf0   : > { %v497_v51 = vadd.f32 %v990_v50, %v304_v47  ;;  %v491_v52 = vpop.f32.mrb[1].mxu0 }
  0xf1   : > { %v492_v53 = vadd.f32 %v491_v52, %v299_v45 }
  0xf2   : > { %v587_v54 = vmul.f32 0.044715, %v497_v51  ;;  %v571_v30 = vmul.f32 0.5, %v497_v51 }
  0xf3   : > { %v586_v56 = vmul.f32 0.044715, %v492_v53  ;;  %v993_v57 = vpop.f32.mrb[2].mxu0  ;;  %v570_v36 = vmul.f32 0.5, %v492_v53 }
  0xf4   : > { %v603_v59 = vmul.f32 %v587_v54, %v497_v51  ;;  %v507_v60 = vadd.f32 %v993_v57, %v314_v46  ;;  %v501_v61 = vpop.f32.mrb[3].mxu0 }
  0xf5   : > { %v602_v62 = vmul.f32 %v586_v56, %v492_v53  ;;  %v502_v63 = vadd.f32 %v501_v61, %v309_v44 }
  0xf6   : > { %v589_v0 = vmul.f32 0.044715, %v507_v60  ;;  %v619_v1 = vmul.f32 %v603_v59, %v497_v51  ;;  %v364_v59 = vpop.permute.xlu1 %363 }
  0xf7   : > { %v588_v2 = vmul.f32 0.044715, %v502_v63  ;;  %v996_v3 = vpop.f32.mrb[4].mxu0  ;;  %v618_v4 = vmul.f32 %v602_v62, %v492_v53 }
  0xf8   : > { %v605_v5 = vmul.f32 %v589_v0, %v507_v60  ;;  %v1357_v6 = vadd.f32 %v996_v3, %v324_v48  ;;  %v511_v7 = vpop.f32.mrb[5].mxu0  ;;  %v635_v8 = vadd.f32 %v619_v1, %v497_v51  ;;  %v573_v48 = vmul.f32 0.5, %v507_v60  ;;  %v359_v1 = vpop.permute.xlu0 %358 }
  0xf9   : > { %v604_v10 = vmul.f32 %v588_v2, %v502_v63  ;;  %v1359_v11 = vadd.f32 %v511_v7, %v319_v49  ;;  %v634_v12 = vadd.f32 %v618_v4, %v492_v53  ;;  %v572_v53 = vmul.f32 0.5, %v502_v63 }
  0xfa   : > { %v621_v14 = vmul.f32 %v605_v5, %v507_v60  ;;  %v591_v15 = vmul.f32 0.044715, %v1357_v6  ;;  %v651_v16 = vmul.f32 0.7978846, %v635_v8  ;;  %v575_v3 = vmul.f32 0.5, %v1357_v6 }
  0xfb   : > { %v620_v17 = vmul.f32 %v604_v10, %v502_v63  ;;  %v590_v18 = vmul.f32 0.044715, %v1359_v11  ;;  %v999_v19 = vpop.f32.mrb[6].mxu0  ;;  %v650_v20 = vmul.f32 0.7978846, %v634_v12 }
  0xfc   : > { %v607_v21 = vmul.f32 %v591_v15, %v1357_v6  ;;  %v1364_v22 = vadd.f32 %v999_v19, %v334_v55  ;;  %v521_v23 = vpop.f32.mrb[7].mxu0  ;;  %1117 = vtanh.f32 %v651_v16  ;;  %v637_v24 = vadd.f32 %v621_v14, %v507_v60 }
  0xfd   : > { %v606_v25 = vmul.f32 %v590_v18, %v1359_v11  ;;  %v1367_v26 = vadd.f32 %v521_v23, %v329_v58  ;;  %1119 = vtanh.f32 %v650_v20  ;;  %v636_v27 = vadd.f32 %v620_v17, %v502_v63 }
  0xfe   : > { %v623_v28 = vmul.f32 %v607_v21, %v1357_v6  ;;  %v593_v29 = vmul.f32 0.044715, %v1364_v22  ;;  %v653_v31 = vmul.f32 0.7978846, %v637_v24  ;;  %v574_v16 = vmul.f32 0.5, %v1359_v11 }
  0xff   : > { %v622_v33 = vmul.f32 %v606_v25, %v1359_v11  ;;  %v592_v34 = vmul.f32 0.044715, %v1367_v26  ;;  %v1002_v35 = vpop.f32.mrb[8].mxu0  ;;  %v652_v37 = vmul.f32 0.7978846, %v636_v27  ;;  %v374_v27 = vpop.permute.xlu1 %373 }
 0x100   : > { %v609_v39 = vmul.f32 %v593_v29, %v1364_v22  ;;  %v1374_v40 = vadd.f32 %v1002_v35, %v344_v9  ;;  %v531_v41 = vpop.f32.mrb[9].mxu0  ;;  %1121 = vtanh.f32 %v653_v31  ;;  %v639_v42 = vadd.f32 %v623_v28, %v1357_v6 }
 0x101   : > { %v608_v43 = vmul.f32 %v592_v34, %v1367_v26  ;;  %v1378_v44 = vadd.f32 %v531_v41, %v339_v13  ;;  %1123 = vtanh.f32 %v652_v37  ;;  %v638_v45 = vadd.f32 %v622_v33, %v1359_v11 }
 0x102   : > { %v625_v46 = vmul.f32 %v609_v39, %v1364_v22  ;;  %v595_v47 = vmul.f32 0.044715, %v1374_v40  ;;  %v655_v49 = vmul.f32 0.7978846, %v639_v42 }
 0x103   : > { %v624_v50 = vmul.f32 %v608_v43, %v1367_v26  ;;  %v594_v51 = vmul.f32 0.044715, %v1378_v44  ;;  %v1005_v52 = vpop.f32.mrb[10].mxu0  ;;  %v654_v54 = vmul.f32 0.7978846, %v638_v45 }
 0x104   : > { %v611_v55 = vmul.f32 %v595_v47, %v1374_v40  ;;  %v1386_v56 = vadd.f32 %v1005_v52, %v354_v32  ;;  %v541_v57 = vpop.f32.mrb[11].mxu0  ;;  %1125 = vtanh.f32 %v655_v49  ;;  %v641_v58 = vadd.f32 %v625_v46, %v1364_v22 }
 0x105   : > { %v610_v61 = vmul.f32 %v594_v51, %v1378_v44  ;;  %v1390_v60 = vadd.f32 %v541_v57, %v349_v38  ;;  %1127 = vtanh.f32 %v654_v54  ;;  %v640_v62 = vadd.f32 %v624_v50, %v1367_v26 }
 0x106   : > { %v1118_v0 = vpop.eup %1117  ;;  %v627_v63 = vmul.f32 %v611_v55, %v1374_v40  ;;  %v597_v2 = vmul.f32 0.044715, %v1386_v56  ;;  %v657_v4 = vmul.f32 0.7978846, %v641_v58 }
 0x107   : > { %v1120_v5 = vpop.eup %1119  ;;  %v626_v7 = vmul.f32 %v610_v61, %v1378_v44  ;;  %v596_v8 = vmul.f32 0.044715, %v1390_v60  ;;  %v1008_v9 = vpop.f32.mrb[12].mxu0  ;;  %v683_v10 = vadd.f32 1.0, %v1118_v0  ;;  %v656_v12 = vmul.f32 0.7978846, %v640_v62 }
 0x108   : > { %v1398_v13 = vadd.f32 %v1008_v9, %v364_v59  ;;  %v551_v14 = vpop.f32.mrb[13].mxu0  ;;  %v682_v15 = vadd.f32 1.0, %v1120_v5  ;;  %1129 = vtanh.f32 %v657_v4  ;;  %v613_v20 = vmul.f32 %v597_v2, %v1386_v56 }
 0x109   : > { %v612_v17 = vmul.f32 %v596_v8, %v1390_v60  ;;  %v1402_v18 = vadd.f32 %v551_v14, %v359_v1  ;;  %v699_v6 = vmul.f32 %v683_v10, %v571_v30  ;;  %1131 = vtanh.f32 %v656_v12  ;;  %v369_v30 = vpop.permute.xlu0 %368 }
 0x10a   : > { %v1122_v19 = vpop.eup %1121  ;;  %v599_v21 = vmul.f32 0.044715, %v1398_v13  ;;  %v698_v23 = vmul.f32 %v682_v15, %v570_v36  ;;  %v642_v24 = vadd.f32 %v626_v7, %v1378_v44  ;;  %v643_v32 = vadd.f32 %v627_v63, %v1374_v40 }
 0x10b   : > { %v1124_v25 = vpop.eup %1123  ;;  %v628_v28 = vmul.f32 %v612_v17, %v1390_v60  ;;  %v598_v11 = vmul.f32 0.044715, %v1402_v18  ;;  %v1011_v29 = vpop.f32.mrb[14].mxu0  ;;  %v685_v31 = vadd.f32 1.0, %v1122_v19  ;;  %v629_v45 = vmul.f32 %v613_v20, %v1386_v56 }
 0x10c   : > { %v615_v33 = vmul.f32 %v599_v21, %v1398_v13  ;;  %v1411_v34 = vadd.f32 %v1011_v29, %v374_v27  ;;  %v561_v35 = vpop.f32.mrb[15].mxu0  ;;  %v1058_v37 = vpack.c.bf16 %v699_v6, %v698_v23  ;;  %v684_v36 = vadd.f32 1.0, %v1124_v25 }
 0x10d   : > { %v614_v38 = vmul.f32 %v598_v11, %v1402_v18  ;;  %v1414_v39 = vadd.f32 %v561_v35, %v369_v30  ;;  %v701_v41 = vmul.f32 %v685_v31, %v573_v48  ;;  %v658_v42 = vmul.f32 0.7978846, %v642_v24 }
 0x10e   : > { %v1126_v43 = vpop.eup %1125  ;;  %v601_v46 = vmul.f32 0.044715, %v1411_v34  ;;  %1059 = vmatprep.subr.bf16.mxu1 %v1058_v37  ;;  %v700_v47 = vmul.f32 %v684_v36, %v572_v53  ;;  %v659_v49 = vmul.f32 0.7978846, %v643_v32  ;;  %v631_v58 = vmul.f32 %v615_v33, %v1398_v13 }
 0x10f   : > { %v1128_v50 = vpop.eup %1127  ;;  %v630_v51 = vmul.f32 %v614_v38, %v1402_v18  ;;  %v600_v52 = vmul.f32 0.044715, %v1414_v39  ;;  %1061 = vmatpush3.bf16.msra.mxu1 %v1058_v37  ;;  %v687_v54 = vadd.f32 1.0, %v1126_v43  ;;  %1133 = vtanh.f32 %v658_v42 }
 0x110   : > { %v617_v55 = vmul.f32 %v601_v46, %v1411_v34  ;;  %v1062_v48 = vpack.c.bf16 %v701_v41, %v700_v47  ;;  %v686_v57 = vadd.f32 1.0, %v1128_v50  ;;  %1135 = vtanh.f32 %v659_v49 }
 0x111   : > { %v616_v59 = vmul.f32 %v600_v52, %v1414_v39  ;;  %v703_v61 = vmul.f32 %v687_v54, %v575_v3  ;;  %v644_v53 = vadd.f32 %v628_v28, %v1390_v60  ;;  %v576_v1 = vmul.f32 0.5, %v1367_v26 }
 0x112   : > { %v1130_v62 = vpop.eup %1129  ;;  %1063 = vmatprep.subr.bf16.mxu1 %v1062_v48  ;;  %v702_v0 = vmul.f32 %v686_v57, %v574_v16  ;;  %v577_v63 = vmul.f32 0.5, %v1364_v22  ;;  %v645_v2 = vadd.f32 %v629_v45, %v1386_v56  ;;  %v633_v5 = vmul.f32 %v617_v55, %v1411_v34 }
 0x113   : > { %v1132_v4 = vpop.eup %1131  ;;  %v632_v7 = vmul.f32 %v616_v59, %v1414_v39  ;;  %1065 = vmatpush3.bf16.msra.mxu1 %v1062_v48  ;;  %v689_v8 = vadd.f32 1.0, %v1130_v62  ;;  %v660_v9 = vmul.f32 0.7978846, %v644_v53  ;;  %v646_v14 = vadd.f32 %v630_v51, %v1402_v18  ;;  %v726_v53 = vpop.permute.xlu1 %725 }
 0x114   : > { %v1066_v3 = vpack.c.bf16 %v703_v61, %v702_v0  ;;  %v688_v10 = vadd.f32 1.0, %v1132_v4  ;;  %v661_v12 = vmul.f32 0.7978846, %v645_v2  ;;  %v647_v26 = vadd.f32 %v631_v58, %v1398_v13  ;;  %v277_v61 = vld [vmem:[%s1466_s2 + $0x8] sm:$0xff]  ;;  %v721_v62 = vpop.permute.xlu0 %720 }
 0x115   : > { %v705_v15 = vmul.f32 %v689_v8, %v577_v63  ;;  %1137 = vtanh.f32 %v660_v9  ;;  %v662_v16 = vmul.f32 0.7978846, %v646_v14  ;;  %v648_v6 = vadd.f32 %v632_v7, %v1414_v39 }
 0x116   : > { %1067 = vmatprep.subr.bf16.mxu1 %v1066_v3  ;;  %v704_v22 = vmul.f32 %v688_v10, %v576_v1  ;;  %1139 = vtanh.f32 %v661_v12  ;;  %v663_v17 = vmul.f32 0.7978846, %v647_v26  ;;  %v649_v19 = vadd.f32 %v633_v5, %v1411_v34 }
 0x117   : > { %1069 = vmatpush3.bf16.msra.mxu1 %v1066_v3  ;;  %1141 = vtanh.f32 %v662_v16  ;;  %v664_v23 = vmul.f32 0.7978846, %v648_v6  ;;  %v578_v27 = vmul.f32 0.5, %v1378_v44  ;;  %v579_v11 = vmul.f32 0.5, %v1374_v40  ;;  %v736_v4 = vpop.permute.xlu1 %735 }
 0x118   : > { %v1070_v20 = vpack.c.bf16 %v705_v15, %v704_v22  ;;  %1143 = vtanh.f32 %v663_v17  ;;  %v665_v24 = vmul.f32 0.7978846, %v649_v19  ;;  %v580_v37 = vmul.f32 0.5, %v1390_v60  ;;  %v731_v7 = vpop.permute.xlu0 %730 }
 0x119   : > { %v1134_v21 = vpop.eup %1133  ;;  %1145 = vtanh.f32 %v664_v23  ;;  %v581_v38 = vmul.f32 0.5, %v1386_v56  ;;  %v582_v45 = vmul.f32 0.5, %v1402_v18  ;;  %v583_v47 = vmul.f32 0.5, %v1398_v13 }
 0x11a   : > { %v1136_v25 = vpop.eup %1135  ;;  %1071 = vmatprep.subr.bf16.mxu1 %v1070_v20  ;;  %v690_v28 = vadd.f32 1.0, %v1134_v21  ;;  %1147 = vtanh.f32 %v665_v24  ;;  %v584_v55 = vmul.f32 0.5, %v1414_v39  ;;  %v585_v48 = vmul.f32 0.5, %v1411_v34  ;;  %v278_v39 = vld [vmem:[%s1466_s2 + $0x10] sm:$0xff]  ;;  %v279_v34 = vld [vmem:[%s1466_s2 + $0x18] sm:$0xff] }
 0x11b   : > { %1073 = vmatpush3.bf16.msra.mxu1 %v1070_v20  ;;  %v691_v29 = vadd.f32 1.0, %v1136_v25 }
 0x11c   : > { %v706_v31 = vmul.f32 %v690_v28, %v578_v27 }
 0x11d   : > { %v707_v32 = vmul.f32 %v691_v29, %v579_v11 }
 0x11f   : > { %v1138_v30 = vpop.eup %1137  ;;  %v1074_v33 = vpack.c.bf16 %v707_v32, %v706_v31 }
 0x120   : > { %v1140_v35 = vpop.eup %1139  ;;  %v692_v36 = vadd.f32 1.0, %v1138_v30 }
 0x121   : > { %1075 = vmatprep.subr.bf16.mxu1 %v1074_v33  ;;  %v693_v41 = vadd.f32 1.0, %v1140_v35  ;;  %v1142_v44 = vpop.eup %1141 }
 0x122   : > { %1077 = vmatpush3.bf16.msra.mxu1 %v1074_v33  ;;  %v708_v42 = vmul.f32 %v692_v36, %v580_v37  ;;  %v1144_v43 = vpop.eup %1143  ;;  %v694_v46 = vadd.f32 1.0, %v1142_v44 }
 0x123   : > { %v709_v40 = vmul.f32 %v693_v41, %v581_v38  ;;  %v695_v49 = vadd.f32 1.0, %v1144_v43  ;;  %v1146_v50 = vpop.eup %1145 }
 0x124   : > { %v710_v52 = vmul.f32 %v694_v46, %v582_v45  ;;  %v1148_v60 = vpop.eup %1147  ;;  %v696_v56 = vadd.f32 1.0, %v1146_v50 }
 0x125   : > { %v1078_v51 = vpack.c.bf16 %v709_v40, %v708_v42  ;;  %v711_v54 = vmul.f32 %v695_v49, %v583_v47  ;;  %v697_v57 = vadd.f32 1.0, %v1148_v60 }
 0x126   : > { %v712_v18 = vmul.f32 %v696_v56, %v584_v55 }
 0x127   : > { %1079 = vmatprep.subr.bf16.mxu1 %v1078_v51  ;;  %v1082_v58 = vpack.c.bf16 %v711_v54, %v710_v52  ;;  %v713_v59 = vmul.f32 %v697_v57, %v585_v48 }
 0x128   : > { %1081 = vmatpush3.bf16.msra.mxu1 %v1078_v51 }
 0x129   : > { %1083 = vmatprep.subr.bf16.mxu1 %v1082_v58  ;;  %v1086_v13 = vpack.c.bf16 %v713_v59, %v712_v18 }
 0x12c   : > { %1085 = vmatpush3.bf16.msra.mxu1 %v1082_v58 }
 0x12d   : > { %1087 = vmatprep.subr.bf16.mxu1 %v1086_v13 }
 0x130   : > { %1089 = vmatpush3.bf16.msra.mxu1 %v1086_v13 }
 0x133   : > { %1045 = vmatmul.mubr.f32.vlgmr.msra.gmra.mrb[0].mxu1 %v277_v61 }
 0x134   : > { %1047 = vmatprep.mubr.f32.mxu1 %v278_v39 }
 0x137   : > { %1048 = vmatmul.mubr.f32.gmra.mrb[2].mxu1 %v279_v34 }
 0x206   : > { %v1046_v0 = vpop.f32.mrb[0].mxu1 }
 0x207   : > { %v810_v1 = vadd.f32 %v1046_v0, %v726_v53  ;;  %v804_v63 = vpop.f32.mrb[1].mxu1 }
 0x208   : > { %v805_v2 = vadd.f32 %v804_v63, %v721_v62 }
 0x209   : > { %825 = vst.msk [vmem:[%s255_s28 + $0x8] sm:$0xff] %vm823_vm1, %v810_v1 }
 0x20a   : > { %824 = vst.msk [vmem:[%s255_s28] sm:$0xff] %vm823_vm1, %v805_v2  ;;  %v1049_v5 = vpop.f32.mrb[2].mxu1 }
 0x20b   : > { %v820_v8 = vadd.f32 %v1049_v5, %v736_v4  ;;  %v814_v9 = vpop.f32.mrb[3].mxu1 }
 0x20c   : > { %v815_v3 = vadd.f32 %v814_v9, %v731_v7 }
 0x20d   : > { %827 = vst.msk [vmem:[%s255_s28 + $0x18] sm:$0xff] %vm823_vm1, %v820_v8 }
 0x20e   : > { %826 = vst.msk [vmem:[%s255_s28 + $0x10] sm:$0xff] %vm823_vm1, %v815_v3 }
 0x20f PF: > { %s15_s20 = sadd.s32 1, %s1171_s20   ;;  %s1470_s18 = smov %s1167_s19 }
 0x210   : > { %p12_p5 = scmp.ge.s32.totalorder %s15_s20, 4   ;;  %s1471_s19 = smov %s1473_s21 }
 0x212   :  { %14 = sbr.rel (!%p12_p5) target bundleno = 2 (0x2), region = 70 }

</bundles_post_ra>
